<compile_context>
chip_gen: v6e
topology: v6e:2x2x1
jax: 0.10.0
libtpu: 0.0.40
codegen_flags: <defaults>
</compile_context>

<pallas_src>
import functools

import jax
import jax.numpy as jnp
from jax import lax
from jax.experimental import pallas as pl
from jax.experimental.pallas import tpu as pltpu

GAMMA = 2.0
ALPHA = 1.0

_MAX_BLOCK_COLS = 8192          # class-tile width when C is vocab-scale
_MIB = 1024 * 1024


def _cdiv(a, b):
    return -(-a // b)


def _round_up(x, m):
    return ((x + m - 1) // m) * m


def _vmem_capacity_bytes():
    """Physical VMEM per TensorCore; conservative (v7x, 64 MiB) fallback."""
    try:
        return int(pltpu.get_tpu_info().vmem_capacity_bytes)
    except Exception:
        return 64 * _MIB


def _plan_tiles(n, c, itemsize, block_rows=None, block_cols=None):
    """Pick (rows, cols) tile sizes from an explicit VMEM budget.

    Working-set estimate per tile row:
      2 x cols x itemsize   double-buffered logits input (native dtype)
      3 x cols x 4          live f32 intermediates (upcast / shifted / exp)
      + small targets / scratch slop
    """
    sub = max(8, 32 // max(1, itemsize))        # sublane multiple for dtype
    cap = _vmem_capacity_bytes()
    ws_budget = min(cap // 2, 48 * _MIB)        # total working-set target

    # --- class (lane) tiling -------------------------------------------------
    if block_cols is None:
        block_cols = c if c <= _MAX_BLOCK_COLS else _MAX_BLOCK_COLS
    if block_cols < c:
        block_cols = max(128, (min(block_cols, c) // 128) * 128)  # lane multiple
    else:
        block_cols = c
    num_col_tiles = _cdiv(c, block_cols)

    # --- row (sublane) tiling ------------------------------------------------
    per_row = 2 * block_cols * itemsize + 3 * block_cols * 4 + 64
    if block_rows is None:
        tn = max(sub, (ws_budget // per_row) // sub * sub)
        # Keep >= 2 row tiles when possible so v7x's two TensorCores both get
        # work on the "parallel" axis (single-TC v5e/v6e are unaffected).
        tn = min(tn, _round_up(_cdiv(n, 2), sub))
    else:
        tn = max(sub, _round_up(block_rows, sub))
    tn = min(tn, _round_up(n, sub))
    num_row_tiles = _cdiv(n, tn)

    est = tn * per_row
    vmem_limit = max(32 * _MIB, min(cap - 16 * _MIB, est + est // 4 + 8 * _MIB))
    return tn, block_cols, num_row_tiles, num_col_tiles, vmem_limit


def _focal_loss_kernel(logits_ref, targets_ref, out_ref, m_sc, s_sc, t_sc, *,
                       n_valid, num_classes, block_rows, block_cols,
                       gamma, alpha, mask_cols):
    i = pl.program_id(0)                 # row-tile index  ("parallel")
    j = pl.program_id(1)                 # class-tile index ("arbitrary": online LSE)
    nj = pl.num_programs(1)

    @pl.when(j == 0)
    def _():
        m_sc[...] = jnp.full_like(m_sc, -jnp.inf)   # running row max
        s_sc[...] = jnp.zeros_like(s_sc)            # running sum(exp(x - m))
        t_sc[...] = jnp.zeros_like(t_sc)            # target-class raw logit

    x = logits_ref[...]                  # (TN, BC) native dtype (bf16 stays bf16)
    tn, bc = x.shape
    tgt = targets_ref[...]               # (TN, 1) int32

    cls = j * block_cols + lax.broadcasted_iota(jnp.int32, (tn, bc), 1)
    if mask_cols:                        # partial last class tile -> kill pad lanes
        x = jnp.where(cls < num_classes, x, jnp.asarray(-jnp.inf, dtype=x.dtype))

    # Row max on the native tile (exact for bf16/f32); f32 only for the LSE path.
    m_old = m_sc[...]
    m_new = jnp.maximum(m_old,
                        jnp.max(x, axis=1, keepdims=True).astype(jnp.float32))

    xf = x.astype(jnp.float32)
    e = jnp.exp(xf - m_new)              # masked lanes: exp(-inf) == 0
    s_sc[...] = (s_sc[...] * jnp.exp(m_old - m_new)
                 + jnp.sum(e, axis=1, keepdims=True))
    m_sc[...] = m_new

    # Target-class logit via masked lane-reduce; the target class appears in
    # exactly one class tile, so a plain accumulate is enough.
    t_sc[...] += jnp.sum(jnp.where(cls == tgt, xf, 0.0), axis=1, keepdims=True)

    @pl.when(j == nj - 1)
    def _():
        logp_t = t_sc[...] - (m_sc[...] + jnp.log(s_sc[...]))   # log softmax[target]
        p_t = jnp.exp(logp_t)
        ce = -logp_t                                            # CE, reduction='none'
        omp = jnp.maximum(1.0 - p_t, 0.0)                       # clamp for safety
        if gamma == 2.0:
            w = omp * omp                                       # no float pow
        elif gamma == 1.0:
            w = omp
        elif gamma == 0.0:
            w = jnp.ones_like(omp)
        else:
            w = jnp.power(omp, jnp.float32(gamma))
        fl = jnp.float32(alpha) * w * ce                        # (TN, 1)

        # Mask garbage rows of the (un-padded) partial last row block.
        row = i * block_rows + lax.broadcasted_iota(jnp.int32, (tn, 1), 0)
        fl = jnp.where(row < n_valid, fl, 0.0)
        out_ref[0, 0] = jnp.sum(fl)      # one partial sum per row tile


def focal_loss(logits, targets, gamma=GAMMA, alpha=ALPHA,
               block_rows=None, block_cols=None):
    """Mean focal loss over (N, C) logits and (N,) integer targets."""
    n, c = logits.shape
    itemsize = jnp.dtype(logits.dtype).itemsize
    tn, bc, num_row_tiles, num_col_tiles, vmem_limit = _plan_tiles(
        n, c, itemsize, block_rows, block_cols)

    targets2d = targets.astype(jnp.int32).reshape(n, 1)

    kernel = functools.partial(
        _focal_loss_kernel,
        n_valid=n, num_classes=c, block_rows=tn, block_cols=bc,
        gamma=float(gamma), alpha=float(alpha),
        mask_cols=(num_col_tiles > 1 and c % bc != 0))

    cost = pl.CostEstimate(
        flops=int(6 * n * c + 16 * n),
        transcendentals=int(n * c + 4 * n),
        bytes_accessed=int(n * c * itemsize + 4 * n + 4 * num_row_tiles))

    # TODO(synk): for C < 128 heads, fold batch rows into the lane axis
    # (segmented lane reduce) to recover lane occupancy; padding C to 128
    # instead would multiply HBM traffic on this bandwidth-bound kernel.
    # TODO(synk): v7x-only, behind a profile: bf16 exp (EUP-bound regime) and
    # pipeline_mode=pl.Buffered(3) on the logits spec if DMA shows exposed.
    partials = pl.pallas_call(
        kernel,
        out_shape=jax.ShapeDtypeStruct((num_row_tiles, 1), jnp.float32),
        grid=(num_row_tiles, num_col_tiles),
        in_specs=[
            pl.BlockSpec((tn, bc), lambda i, j: (i, j)),      # logits tile (VMEM)
            pl.BlockSpec((tn, 1), lambda i, j: (i, 0)),       # targets tile (VMEM)
        ],
        out_specs=pl.BlockSpec((1, 1), lambda i, j: (i, 0),
                               memory_space=pltpu.SMEM),
        scratch_shapes=[pltpu.VMEM((tn, 1), jnp.float32)] * 3,
        compiler_params=pltpu.CompilerParams(
            dimension_semantics=("parallel", "arbitrary"),
            vmem_limit_bytes=int(vmem_limit)),
        cost_estimate=cost,
    )(logits, targets2d)

    # Tiny final reduce + mean over the GLOBAL batch size in the wrapper.
    return jnp.sum(partials) / jnp.float32(n)


def focal_loss_ref(logits, targets, gamma=GAMMA, alpha=ALPHA):
    # Pure-JAX reference mirroring the PyTorch module.
    log_p = jax.nn.log_softmax(logits.astype(jnp.float32), axis=1)
    logp_t = jnp.take_along_axis(log_p, targets[:, None], axis=1)[:, 0]
    prob = jnp.exp(logp_t)
    ce = -logp_t
    fl = alpha * (1.0 - prob) ** gamma * ce
    return jnp.mean(fl)


if __name__ == "__main__":
    key = jax.random.PRNGKey(0)
    k1, k2, k3, k4, k5, k6 = jax.random.split(key, 6)

    # 1) Small f32 case, fully automatic tiling (single tile).
    N, C = 8, 32
    logits = jax.random.normal(k1, (N, C), dtype=jnp.float32)
    targets = jax.random.randint(k2, (N,), 0, C, dtype=jnp.int32)
    loss = focal_loss(logits, targets)
    jax.block_until_ready(loss)
    ref = focal_loss_ref(logits, targets)
    assert jnp.allclose(loss, ref, rtol=1e-5, atol=1e-6), (loss, ref)

    # 2) Ragged batch, multiple row tiles, NO host-side padding: N=40 with
    #    16-row tiles -> 3 tiles; the last tile's garbage rows are masked
    #    inside the kernel (jnp.pad removed to avoid an extra HBM pass).
    N2, C2 = 40, 32
    logits2 = jax.random.normal(k3, (N2, C2), dtype=jnp.float32)
    targets2 = jax.random.randint(k4, (N2,), 0, C2, dtype=jnp.int32)
    loss2 = focal_loss(logits2, targets2, block_rows=16)
    jax.block_until_ready(loss2)
    ref2 = focal_loss_ref(logits2, targets2)
    assert jnp.allclose(loss2, ref2, rtol=1e-5, atol=1e-6), (loss2, ref2)

    # 3) bf16 logits over HBM (half the DMA bytes), f32 math in-kernel; the
    #    auto planner uses the bf16 sublane multiple (16) and 2 row tiles.
    logits_bf16 = logits2.astype(jnp.bfloat16)
    loss3 = focal_loss(logits_bf16, targets2)
    jax.block_until_ready(loss3)
    ref3 = focal_loss_ref(logits_bf16.astype(jnp.float32), targets2)
    assert jnp.allclose(loss3, ref3, rtol=2e-2, atol=2e-3), (loss3, ref3)

    # 4) Class-tiled online log-sum-exp path: C=200 with 128-wide class tiles
    #    -> 2 "arbitrary" col tiles (partial last tile, lane masking) plus a
    #    partial last row tile.
    N4, C4 = 24, 200
    logits4 = jax.random.normal(k5, (N4, C4), dtype=jnp.float32)
    targets4 = jax.random.randint(k6, (N4,), 0, C4, dtype=jnp.int32)
    loss4 = focal_loss(logits4, targets4, block_cols=128)
    jax.block_until_ready(loss4)
    ref4 = focal_loss_ref(logits4, targets4)
    assert jnp.allclose(loss4, ref4, rtol=1e-5, atol=1e-6), (loss4, ref4)

    # 5) Fully automatic tiling on a slightly larger case (>= 2 row tiles so
    #    both v7x TensorCores get work on the "parallel" axis).
    N5, C5 = 256, 512
    logits5 = jax.random.normal(k1, (N5, C5), dtype=jnp.float32)
    targets5 = jax.random.randint(k2, (N5,), 0, C5, dtype=jnp.int32)
    loss5 = focal_loss(logits5, targets5)
    jax.block_until_ready(loss5)
    ref5 = focal_loss_ref(logits5, targets5)
    assert jnp.allclose(loss5, ref5, rtol=1e-5, atol=1e-6), (loss5, ref5)

    print("KERNEL_OK")
</pallas_src>

<mosaic_0001>
module attributes {stable_mosaic.version = 11 : i64} {
  func.func @_focal_loss_kernel(%arg0: i32, %arg1: i32, %arg2: memref<8x32xf32, #tpu.memory_space<vmem>>, %arg3: memref<8x1xi32, #tpu.memory_space<vmem>>, %arg4: memref<1x1xf32, #tpu.memory_space<smem>>, %arg5: memref<8x1xf32, #tpu.memory_space<vmem>>, %arg6: memref<8x1xf32, #tpu.memory_space<vmem>>, %arg7: memref<8x1xf32, #tpu.memory_space<vmem>>) attributes {dimension_semantics = [#tpu.dimension_semantics<parallel>, #tpu.dimension_semantics<arbitrary>], iteration_bounds = array<i64: 1, 1>, scalar_prefetch = 0 : i64, scratch_operands = 3 : i64, tpu.core_type = #tpu.core_type<tc>, window_params = [{transform_indices = @transform_0, window_bounds = array<i64: 8, 32>}, {transform_indices = @transform_1, window_bounds = array<i64: 8, 1>}, {transform_indices = @transform_2, window_bounds = array<i64: 1, 1>}]} {
    %c0_i32 = arith.constant 0 : i32
    %0 = arith.cmpi eq, %arg1, %c0_i32 : i32
    %1 = arith.extui %0 : i1 to i32
    %c0_i32_0 = arith.constant 0 : i32
    %2 = arith.cmpi ne, %1, %c0_i32_0 : i32
    scf.if %2 {
      %cst_21 = arith.constant 0xFF800000 : f32
      %37 = vector.broadcast %cst_21 : f32 to vector<8x1xf32>
      %c0_22 = arith.constant 0 : index
      %c0_23 = arith.constant 0 : index
      %38 = vector.load %arg5[%c0_22, %c0_23] : memref<8x1xf32, #tpu.memory_space<vmem>>, vector<8x1xf32>
      tpu.vector_store %arg5[%c0_22, %c0_23], %37 {strides = array<i32>} : memref<8x1xf32, #tpu.memory_space<vmem>>, vector<8x1xf32>,
      %cst_24 = arith.constant 0.000000e+00 : f32
      %39 = vector.broadcast %cst_24 : f32 to vector<8x1xf32>
      %c0_25 = arith.constant 0 : index
      %c0_26 = arith.constant 0 : index
      %40 = vector.load %arg6[%c0_25, %c0_26] : memref<8x1xf32, #tpu.memory_space<vmem>>, vector<8x1xf32>
      tpu.vector_store %arg6[%c0_25, %c0_26], %39 {strides = array<i32>} : memref<8x1xf32, #tpu.memory_space<vmem>>, vector<8x1xf32>,
      %cst_27 = arith.constant 0.000000e+00 : f32
      %41 = vector.broadcast %cst_27 : f32 to vector<8x1xf32>
      %c0_28 = arith.constant 0 : index
      %c0_29 = arith.constant 0 : index
      %42 = vector.load %arg7[%c0_28, %c0_29] : memref<8x1xf32, #tpu.memory_space<vmem>>, vector<8x1xf32>
      tpu.vector_store %arg7[%c0_28, %c0_29], %41 {strides = array<i32>} : memref<8x1xf32, #tpu.memory_space<vmem>>, vector<8x1xf32>,
    } else {
    }
    %c0 = arith.constant 0 : index
    %c0_1 = arith.constant 0 : index
    %3 = vector.load %arg2[%c0, %c0_1] : memref<8x32xf32, #tpu.memory_space<vmem>>, vector<8x32xf32>
    %c0_2 = arith.constant 0 : index
    %c0_3 = arith.constant 0 : index
    %4 = vector.load %arg3[%c0_2, %c0_3] : memref<8x1xi32, #tpu.memory_space<vmem>>, vector<8x1xi32>
    %c32_i32 = arith.constant 32 : i32
    %5 = arith.muli %arg1, %c32_i32 : i32
    %6 = tpu.iota {dimensions = array<i32: 1>} : vector<8x32xi32>
    %7 = vector.broadcast %5 : i32 to vector<8x32xi32>
    %8 = arith.addi %7, %6 : vector<8x32xi32>
    %c0_4 = arith.constant 0 : index
    %c0_5 = arith.constant 0 : index
    %9 = vector.load %arg5[%c0_4, %c0_5] : memref<8x1xf32, #tpu.memory_space<vmem>>, vector<8x1xf32>
    %cst = arith.constant dense<0xFF800000> : vector<8xf32>
    %10 = vector.multi_reduction <maximumf>, %3, %cst [1] : vector<8x32xf32> to vector<8xf32>
    %11 = vector.shape_cast %10 : vector<8xf32> to vector<8x1xf32>
    %12 = arith.maximumf %9, %11 : vector<8x1xf32>
    %13 = vector.broadcast %12 : vector<8x1xf32> to vector<8x32xf32>
    %14 = arith.subf %3, %13 : vector<8x32xf32>
    %15 = math.exp %14 : vector<8x32xf32>
    %c0_6 = arith.constant 0 : index
    %c0_7 = arith.constant 0 : index
    %16 = vector.load %arg6[%c0_6, %c0_7] : memref<8x1xf32, #tpu.memory_space<vmem>>, vector<8x1xf32>
    %17 = arith.subf %9, %12 : vector<8x1xf32>
    %18 = math.exp %17 : vector<8x1xf32>
    %19 = arith.mulf %16, %18 : vector<8x1xf32>
    %cst_8 = arith.constant dense<0.000000e+00> : vector<8xf32>
    %20 = vector.multi_reduction <add>, %15, %cst_8 [1] : vector<8x32xf32> to vector<8xf32>
    %21 = vector.shape_cast %20 : vector<8xf32> to vector<8x1xf32>
    %22 = arith.addf %19, %21 : vector<8x1xf32>
    %c0_9 = arith.constant 0 : index
    %c0_10 = arith.constant 0 : index
    %23 = vector.load %arg6[%c0_9, %c0_10] : memref<8x1xf32, #tpu.memory_space<vmem>>, vector<8x1xf32>
    tpu.vector_store %arg6[%c0_9, %c0_10], %22 {strides = array<i32>} : memref<8x1xf32, #tpu.memory_space<vmem>>, vector<8x1xf32>,
    %c0_11 = arith.constant 0 : index
    %c0_12 = arith.constant 0 : index
    %24 = vector.load %arg5[%c0_11, %c0_12] : memref<8x1xf32, #tpu.memory_space<vmem>>, vector<8x1xf32>
    tpu.vector_store %arg5[%c0_11, %c0_12], %12 {strides = array<i32>} : memref<8x1xf32, #tpu.memory_space<vmem>>, vector<8x1xf32>,
    %c0_13 = arith.constant 0 : index
    %c0_14 = arith.constant 0 : index
    %25 = vector.load %arg7[%c0_13, %c0_14] : memref<8x1xf32, #tpu.memory_space<vmem>>, vector<8x1xf32>
    %26 = vector.broadcast %4 : vector<8x1xi32> to vector<8x32xi32>
    %27 = arith.cmpi eq, %8, %26 : vector<8x32xi32>
    %cst_15 = arith.constant 0.000000e+00 : f32
    %28 = vector.broadcast %cst_15 : f32 to vector<8x32xf32>
    %29 = arith.select %27, %3, %28 : vector<8x32xi1>, vector<8x32xf32>
    %cst_16 = arith.constant dense<0.000000e+00> : vector<8xf32>
    %30 = vector.multi_reduction <add>, %29, %cst_16 [1] : vector<8x32xf32> to vector<8xf32>
    %31 = vector.shape_cast %30 : vector<8xf32> to vector<8x1xf32>
    %32 = arith.addf %25, %31 : vector<8x1xf32>
    %c0_17 = arith.constant 0 : index
    %c0_18 = arith.constant 0 : index
    %33 = vector.load %arg7[%c0_17, %c0_18] : memref<8x1xf32, #tpu.memory_space<vmem>>, vector<8x1xf32>
    tpu.vector_store %arg7[%c0_17, %c0_18], %32 {strides = array<i32>} : memref<8x1xf32, #tpu.memory_space<vmem>>, vector<8x1xf32>,
    %c0_i32_19 = arith.constant 0 : i32
    %34 = arith.cmpi eq, %arg1, %c0_i32_19 : i32
    %35 = arith.extui %34 : i1 to i32
    %c0_i32_20 = arith.constant 0 : i32
    %36 = arith.cmpi ne, %35, %c0_i32_20 : i32
    scf.if %36 {
      %c0_21 = arith.constant 0 : index
      %c0_22 = arith.constant 0 : index
      %37 = vector.load %arg7[%c0_21, %c0_22] : memref<8x1xf32, #tpu.memory_space<vmem>>, vector<8x1xf32>
      %c0_23 = arith.constant 0 : index
      %c0_24 = arith.constant 0 : index
      %38 = vector.load %arg5[%c0_23, %c0_24] : memref<8x1xf32, #tpu.memory_space<vmem>>, vector<8x1xf32>
      %c0_25 = arith.constant 0 : index
      %c0_26 = arith.constant 0 : index
      %39 = vector.load %arg6[%c0_25, %c0_26] : memref<8x1xf32, #tpu.memory_space<vmem>>, vector<8x1xf32>
      %40 = math.log %39 : vector<8x1xf32>
      %41 = arith.addf %38, %40 : vector<8x1xf32>
      %42 = arith.subf %37, %41 : vector<8x1xf32>
      %43 = math.exp %42 : vector<8x1xf32>
      %cst_27 = arith.constant 0.000000e+00 : f32
      %44 = vector.broadcast %cst_27 : f32 to vector<8x1xf32>
      %45 = arith.subf %44, %42 : vector<8x1xf32>
      %cst_28 = arith.constant 1.000000e+00 : f32
      %46 = vector.broadcast %cst_28 : f32 to vector<8x1xf32>
      %47 = arith.subf %46, %43 : vector<8x1xf32>
      %cst_29 = arith.constant 0.000000e+00 : f32
      %48 = vector.broadcast %cst_29 : f32 to vector<8x1xf32>
      %49 = arith.maximumf %47, %48 : vector<8x1xf32>
      %50 = arith.mulf %49, %49 : vector<8x1xf32>
      %cst_30 = arith.constant 1.000000e+00 : f32
      %51 = vector.broadcast %cst_30 : f32 to vector<8x1xf32>
      %52 = arith.mulf %51, %50 : vector<8x1xf32>
      %53 = arith.mulf %52, %45 : vector<8x1xf32>
      %c8_i32 = arith.constant 8 : i32
      %54 = arith.muli %arg0, %c8_i32 : i32
      %55 = tpu.iota {dimensions = array<i32: 0>} : vector<8x1xi32>
      %56 = vector.broadcast %54 : i32 to vector<8x1xi32>
      %57 = arith.addi %56, %55 : vector<8x1xi32>
      %c8_i32_31 = arith.constant 8 : i32
      %58 = vector.broadcast %c8_i32_31 : i32 to vector<8x1xi32>
      %59 = arith.cmpi slt, %57, %58 : vector<8x1xi32>
      %cst_32 = arith.constant 0.000000e+00 : f32
      %60 = vector.broadcast %cst_32 : f32 to vector<8x1xf32>
      %61 = arith.select %59, %53, %60 : vector<8x1xi1>, vector<8x1xf32>
      %62 = vector.shape_cast %61 : vector<8x1xf32> to vector<1x8x1xf32>
      %cst_33 = arith.constant dense<0.000000e+00> : vector<1xf32>
      %63 = vector.multi_reduction <add>, %62, %cst_33 [1, 2] : vector<1x8x1xf32> to vector<1xf32>
      %64 = vector.shape_cast %63 : vector<1xf32> to vector<1x1x1xf32>
      %65 = vector.extract %64[0, 0, 0] : f32 from vector<1x1x1xf32>
      %c0_34 = arith.constant 0 : index
      %c0_35 = arith.constant 0 : index
      %66 = memref.load %arg4[%c0_34, %c0_35] : memref<1x1xf32, #tpu.memory_space<smem>>
      memref.store %65, %arg4[%c0_34, %c0_35] : memref<1x1xf32, #tpu.memory_space<smem>>
    } else {
    }
    return
  }
  func.func @transform_0(%arg0: i32, %arg1: i32) -> (i32, i32) {
    %c0_i32 = arith.constant 0 : i32
    return %arg0, %arg1 : i32, i32
  }
  func.func @transform_1(%arg0: i32, %arg1: i32) -> (i32, i32) {
    %c0_i32 = arith.constant 0 : i32
    %c0_i32_0 = arith.constant 0 : i32
    return %arg0, %c0_i32 : i32, i32
  }
  func.func @transform_2(%arg0: i32, %arg1: i32) -> (i32, i32) {
    %c0_i32 = arith.constant 0 : i32
    %c0_i32_0 = arith.constant 0 : i32
    return %arg0, %c0_i32 : i32, i32
  }
}

</mosaic_0001>

<bundles_post_ra>
// kernel: tpu_custom_call.1
= control target key start
LH: loop header
LB: loop body
LE: loop exit
PB: predicated region body
PF: predicated region fallthrough
CT: control target
= control target key end

     0   :  { %vm28_vm0 = vcmask 261120   ;;  %s177_s0 = inlined_call_operand.vmem [shape: f32[8,32], index: 0, kind: input, shape index: {}]   ;;  %s178_s1 = inlined_call_operand.vmem [shape: s32[8,1], index: 1, kind: input, shape index: {}]   ;;  %s179_s2 = inlined_call_operand.hbm [shape: f32[1,1], index: 2, kind: output, shape index: {}]  }
   0x1   :  { %v20_v0 = vld [vmem:[%s177_s0] sm:$0xff] }
   0x2   :  { %7 = vsyncpa [#allocation6], 0  ;;  %v29_v1 = vsel %vm28_vm0, %v20_v0, -inf  ;;  %vm16_vm1 = vcmask 7168   ;;  %v139_v2 = vmov -inf   ;;  %v140_v3 = vmov 0  }
   0x3   :  { %30 = vmax.xlane.f32.xlu0 %v29_v1  ;;  %17 = vst.msk [vmem:[#allocation2] sm:$0xff] %vm16_vm1, %v139_v2  ;;  %120 = vset.pattern.permute.xlu1 %v140_v3  ;;  %v21_v4 = vld [vmem:[%s178_s1] sm:$0xff]  ;;  %v141_v5 = vmov 0.0   ;;  %v23_v13 = vlaneseq  ;;  %s142_s1 = smov [#allocation5]  }
   0x4   :  { %119 = vset.pattern.permute.xlu0 %v140_v3  ;;  %55 = vperm.xlu1 %120, %v21_v4   ;;  %18 = vst.msk [vmem:[#allocation3] sm:$0xff] %vm16_vm1, %v141_v5  ;;  %19 = vst.msk [vmem:[#allocation4] sm:$0xff] %vm16_vm1, %v141_v5 }
   0x5   :  { %v24_v14 = vand.u32 127, %v23_v13 }
   0xa   :  { %v27_v6 = vld [vmem:[#allocation2] sm:$0xff] }
   0xb   :  { %v41_v22 = vld [vmem:[#allocation3] sm:$0xff]  ;;  %v53_v26 = vld [vmem:[#allocation4] sm:$0xff] }
  0x7f   :  { %v56_v15 = vpop.permute.xlu1 %55 }
  0x80   :  { %vm57_vm2 = vcmp.eq.s32.totalorder %v24_v14, %v56_v15 }
  0x81   :  { %v58_v17 = vsel %vm57_vm2, %v20_v0, 0.0 }
  0x82   :  { %v59_v19 = vsel %vm28_vm0, %v58_v17, 0.0 }
  0x8c   :  { %v31_v7 = vpop.xlane.xlu0 %30 }
  0x8d   :  { %v32_v8 = vmax.f32 %v27_v6, %v31_v7 }
  0x8f   :  { %v42_v9 = vsub.f32 %v27_v6, %v32_v8  ;;  %52 = vst.msk [vmem:[#allocation2] sm:$0xff] %vm16_vm1, %v32_v8  ;;  %35 = vperm.xlu0 %119, %v32_v8  }
  0x91   :  { %v43_v20 = vmul.f32 1.442695, %v42_v9 }
  0x96   :  { %v68_v33 = vld [vmem:[#allocation2] sm:$0xff] }
 0x10a   :  { %v36_v10 = vpop.permute.xlu0 %35 }
 0x10b   :  { %v38_v11 = vsub.f32 %v20_v0, %v36_v10 }
 0x10d   :  { %v39_v12 = vmul.f32 1.442695, %v38_v11 }
 0x10f   :  { %121 = vpow2.f32 %v39_v12 }
 0x110   :  { %123 = vpow2.f32 %v43_v20 }
 0x11c   :  { %v122_v16 = vpop.eup %121 }
 0x11d   :  { %v46_v18 = vsel %vm28_vm0, %v122_v16, 0.0  ;;  %v124_v21 = vpop.eup %123 }
 0x11e   :  { %47 = vadd.xlane.f32.xlu1 %v46_v18  ;;  %v45_v23 = vmul.f32 %v124_v21, %v41_v22 }
 0x122   :  { %60 = vadd.xlane.f32.xlu1 %v59_v19 }
 0x1a7   :  { %v48_v24 = vpop.xlane.xlu1 %47 }
 0x1a8   :  { %v49_v25 = vadd.f32 %v48_v24, %v45_v23 }
 0x1aa   :  { %51 = vst.msk [vmem:[#allocation3] sm:$0xff] %vm16_vm1, %v49_v25 }
 0x1ab   :  { %v61_v27 = vpop.xlane.xlu1 %60 }
 0x1ac   :  { %v62_v28 = vadd.f32 %v61_v27, %v53_v26 }
 0x1ae   :  { %63 = vst.msk [vmem:[#allocation4] sm:$0xff] %vm16_vm1, %v62_v28 }
 0x1b1   :  { %v69_v29 = vld [vmem:[#allocation3] sm:$0xff] }
 0x1b2   :  { %125 = vlog2.f32 %v69_v29 }
 0x1b5   :  { %v67_v32 = vld [vmem:[#allocation4] sm:$0xff] }
 0x1bf   :  { %v126_v30 = vpop.eup %125 }
 0x1c0   :  { %v71_v31 = vmul.f32 0.6931472, %v126_v30 }
 0x1c2   :  { %v72_v34 = vadd.f32 %v71_v31, %v68_v33 }
 0x1c4   :  { %v73_v35 = vsub.f32 %v67_v32, %v72_v34 }
 0x1c6   :  { %v74_v36 = vmul.f32 1.442695, %v73_v35  ;;  %v76_v40 = vsub.f32 0.0, %v73_v35 }
 0x1c8   :  { %127 = vpow2.f32 %v74_v36 }
 0x1d5   :  { %v128_v37 = vpop.eup %127 }
 0x1d6   :  { %v77_v38 = vsub.f32 1.0, %v128_v37 }
 0x1d8   :  { %v78_v39 = vmax.f32 %v77_v38, 0.0 }
 0x1da   :  { %v79_v41 = vmul.f32 %v78_v39, %v78_v39 }
 0x1dc   :  { %v80_v42 = vmul.f32 %v79_v41, %v76_v40 }
 0x1de   :  { %v88_v43 = vsel %vm16_vm1, %v80_v42, 0.0 }
 0x1df   :  { %89 = vadd.xlane.f32.xlu1 %v88_v43 }
 0x268   :  { %v90_v44 = vpop.xlane.xlu1 %89 }
 0x269   :  { %v91_v45 = vrot.slane %v90_v44, 4 }
 0x26b   :  { %v92_v46 = vadd.f32 %v91_v45, %v90_v44 }
 0x26d   :  { %v93_v47 = vrot.slane %v92_v46, 2 }
 0x26f   :  { %v94_v48 = vadd.f32 %v93_v47, %v92_v46 }
 0x271   :  { %v95_v49 = vrot.slane %v94_v48, 1 }
 0x273   :  { %v96_v50 = vadd.f32 %v95_v49, %v94_v48 }
 0x275   :  { %113 = vpush %v96_v50 }
 0x2a6   :  { %s114_s0 = spop %113 }
 0x2a7   :  { %99 = sst [smem:[#allocation5]] %s114_s0 }
 0x2a8   :  { %107 = dma.smem_to_hbm %s142_s1, 16, %s179_s2, [#allocation6]  }
 0x2a9   :  { %137 = dma.done.wait [#allocation6], 16  }
 0x2aa   :  { %138 = vsyncadd [#allocation6], 4294967280 }
 0x2ab   :  { %111 = sfence }
 0x2ac   :  { %112 = vsyncpa [#allocation6], 1 }

</bundles_post_ra>
